<compile_context>
chip_gen: v7x
topology: tpu7x:2x2x1
jax: 0.10.0
libtpu: 0.0.40
codegen_flags: <defaults>
</compile_context>

<pallas_src>
import math

import jax
import jax.numpy as jnp
from jax.experimental import pallas as pl
from jax.experimental.pallas import tpu as pltpu


def _sincos_kernel(steps_ref, freq_ref, phase_ref, out_ref):
    # steps_ref: (TN, 1)   f32 -- timestep row tile
    # freq_ref:  (1, dim)  f32 -- resident frequency row (first half duplicated)
    # phase_ref: (1, dim)  f32 -- 0 for the sin half, pi/2 for the cos half
    # One VPU mul + add and one sin per element; cast only at the store.
    ang = steps_ref[...] * freq_ref[...] + phase_ref[...]
    out_ref[...] = jnp.sin(ang).astype(out_ref.dtype)


def _round_up(x: int, m: int) -> int:
    return (x + m - 1) // m * m


def sin_position_embeddings(steps=None, dim: int = 128, T: float = 1000.0, *,
                            out_dtype=jnp.float32, max_tile_n: int | None = None):
    """Pallas equivalent of SinPositionEmbeddingsClass.forward.

    steps: 1-D int/float array of timesteps (default: arange(1000), as in the
    module).  Returns (N, dim) in `out_dtype` (f32 default; bf16 optional).
    """
    assert dim % 2 == 0 and dim >= 4, "dim must be even and >= 4 (half-1 divide)"
    if steps is None:
        steps = jnp.arange(0, 1000, dtype=jnp.int32)

    # Integer timesteps > 2^24 lose exactness in the f32 cast (same as the
    # f32 reference / torch path) -- documented, not special-cased.
    steps_f = jnp.asarray(steps, dtype=jnp.float32).reshape(-1, 1)   # (N, 1)
    n = steps_f.shape[0]
    half = dim // 2

    # Hoisted tables, computed once in plain JAX (resident (1, dim) rows).
    neg_log_scale = -(math.log(T) / (half - 1))
    freqs = jnp.exp(jnp.arange(half, dtype=jnp.float32) * neg_log_scale)
    freq_row = jnp.concatenate([freqs, freqs])[None, :]               # (1, dim)
    phase_row = jnp.concatenate(
        [jnp.zeros((half,), jnp.float32),
         jnp.full((half,), math.pi / 2, jnp.float32)])[None, :]       # (1, dim)

    # ---- TILE_N from a VMEM byte budget --------------------------------------
    # Per row, per buffer:
    #   steps block (tn, 1) f32 is lane-padded to 128 lanes -> 512 B
    #   out   block (tn, dim)   occupies round_up(dim,128) lanes * itemsize
    # Both are double-buffered by the BlockSpec pipeline.
    out_itemsize = jnp.dtype(out_dtype).itemsize
    lane_dim = _round_up(dim, 128)
    bytes_per_row = 2 * (128 * 4 + lane_dim * out_itemsize)
    tile_budget = 12 * 1024 * 1024                    # leaves headroom under 32 MiB
    tn = max(8, (tile_budget // bytes_per_row) // 8 * 8)
    if max_tile_n is not None:
        tn = min(tn, _round_up(max_tile_n, 8))
    # v7x megacore: ensure >= 2 grid steps whenever there is enough work so the
    # "parallel" row axis actually shards across both TensorCores.
    tn = min(tn, max(8, _round_up(pl.cdiv(n, 2), 8)))
    tn = max(8, tn)
    grid = (pl.cdiv(n, tn),)

    cost = pl.CostEstimate(
        flops=2 * n * dim,                            # mul + add per element
        transcendentals=n * dim,                      # one sin per element
        bytes_accessed=n * 4 + 2 * dim * 4 + n * dim * out_itemsize,
    )

    out = pl.pallas_call(
        _sincos_kernel,
        out_shape=jax.ShapeDtypeStruct((n, dim), out_dtype),
        grid_spec=pltpu.PrefetchScalarGridSpec(
            num_scalar_prefetch=0,
            grid=grid,
            in_specs=[
                pl.BlockSpec((tn, 1), lambda i: (i, 0)),      # steps row tile
                pl.BlockSpec((1, dim), lambda i: (0, 0)),     # freq (resident)
                pl.BlockSpec((1, dim), lambda i: (0, 0)),     # phase (resident)
            ],
            out_specs=pl.BlockSpec((tn, dim), lambda i: (i, 0)),
        ),
        compiler_params=pltpu.CompilerParams(
            dimension_semantics=("parallel",),        # shard rows across TCs (v7x)
            vmem_limit_bytes=32 * 1024 * 1024,        # keep big tiles legal on v5e
        ),
        cost_estimate=cost,
    )(steps_f, freq_row, phase_row)

    return out


def _reference(steps, dim=128, T=1000.0):
    """Pure-JAX reference mirroring the PyTorch forward."""
    steps = jnp.asarray(steps, dtype=jnp.float32)
    half = dim // 2
    emb_scale = math.log(T) / (half - 1)
    freqs = jnp.exp(jnp.arange(half, dtype=jnp.float32) * -emb_scale)
    ang = steps[:, None] * freqs[None, :]
    return jnp.concatenate([jnp.sin(ang), jnp.cos(ang)], axis=-1)


if __name__ == "__main__":
    key = jax.random.PRNGKey(0)

    # Small case matching the module defaults (dim=128, T=1000).
    steps_small = jnp.arange(0, 8, dtype=jnp.int32)
    out = jax.block_until_ready(sin_position_embeddings(steps_small, dim=128))
    ref = _reference(steps_small, dim=128)
    assert out.shape == (8, 128) and out.dtype == jnp.float32
    assert jnp.allclose(out, ref, atol=1e-5, rtol=1e-5), "small-case mismatch"

    # Random timesteps (deterministic via PRNGKey(0)); exercises >1 grid step.
    steps_rand = jax.random.randint(key, (16,), 0, 1000)
    out_r = jax.block_until_ready(sin_position_embeddings(steps_rand, dim=128))
    ref_r = _reference(steps_rand, dim=128)
    assert jnp.allclose(out_r, ref_r, atol=2e-4, rtol=1e-5), "random-case mismatch"

    # Module default steps=arange(1000): forced small tile -> multi-step grid
    # with a ragged last tile.  Tolerance covers the sin(x+pi/2) phase-add
    # rounding for angles up to ~1e3 (<= ~3e-5).
    steps_big = jnp.arange(0, 1000, dtype=jnp.int32)
    out_big = jax.block_until_ready(
        sin_position_embeddings(steps_big, dim=128, max_tile_n=256))
    ref_big = _reference(steps_big, dim=128)
    assert out_big.shape == (1000, 128)
    assert jnp.allclose(out_big, ref_big, atol=2e-4, rtol=1e-5), "big-case mismatch"

    # Auto-sized tile (budget-derived; 2 grid steps for the v7x 2-TC split).
    out_auto = jax.block_until_ready(sin_position_embeddings(steps_big, dim=128))
    assert jnp.allclose(out_auto, ref_big, atol=2e-4, rtol=1e-5), "auto-tile mismatch"

    # dim not a multiple of 128 -> full-minor-dim (masked) stores, no pad+slice.
    out_odd = jax.block_until_ready(sin_position_embeddings(steps_small, dim=96))
    ref_odd = _reference(steps_small, dim=96)
    assert out_odd.shape == (8, 96)
    assert jnp.allclose(out_odd, ref_odd, atol=1e-5, rtol=1e-5), "non-128-dim mismatch"

    # bf16 output path: f32 math, cast at the store (halves writeback traffic).
    out_bf = jax.block_until_ready(
        sin_position_embeddings(steps_big, dim=128, out_dtype=jnp.bfloat16))
    assert out_bf.dtype == jnp.bfloat16
    assert jnp.allclose(out_bf.astype(jnp.float32), ref_big, atol=8e-3, rtol=0), \
        "bf16-output mismatch"

    print("KERNEL_OK")
</pallas_src>

<mosaic_0001>
module attributes {stable_mosaic.version = 11 : i64} {
  func.func @_sincos_kernel(%arg0: i32, %arg1: memref<8x1xf32, #tpu.memory_space<vmem>>, %arg2: memref<1x128xf32, #tpu.memory_space<vmem>>, %arg3: memref<1x128xf32, #tpu.memory_space<vmem>>, %arg4: memref<8x128xf32, #tpu.memory_space<vmem>>) attributes {dimension_semantics = [#tpu.dimension_semantics<parallel>], iteration_bounds = array<i64: 1>, scalar_prefetch = 0 : i64, scratch_operands = 0 : i64, tpu.core_type = #tpu.core_type<tc>, window_params = [{transform_indices = @transform_0, window_bounds = array<i64: 8, 1>}, {pipeline_mode = #tpu.pipeline_mode<synchronous>, transform_indices = @transform_1, window_bounds = array<i64: 1, 128>}, {pipeline_mode = #tpu.pipeline_mode<synchronous>, transform_indices = @transform_2, window_bounds = array<i64: 1, 128>}, {transform_indices = @transform_3, window_bounds = array<i64: 8, 128>}]} {
    %c0 = arith.constant 0 : index
    %c0_0 = arith.constant 0 : index
    %0 = vector.load %arg1[%c0, %c0_0] : memref<8x1xf32, #tpu.memory_space<vmem>>, vector<8x1xf32>
    %c0_1 = arith.constant 0 : index
    %c0_2 = arith.constant 0 : index
    %1 = vector.load %arg2[%c0_1, %c0_2] : memref<1x128xf32, #tpu.memory_space<vmem>>, vector<1x128xf32>
    %2 = vector.broadcast %0 : vector<8x1xf32> to vector<8x128xf32>
    %3 = vector.broadcast %1 : vector<1x128xf32> to vector<8x128xf32>
    %4 = arith.mulf %2, %3 : vector<8x128xf32>
    %c0_3 = arith.constant 0 : index
    %c0_4 = arith.constant 0 : index
    %5 = vector.load %arg3[%c0_3, %c0_4] : memref<1x128xf32, #tpu.memory_space<vmem>>, vector<1x128xf32>
    %6 = vector.broadcast %5 : vector<1x128xf32> to vector<8x128xf32>
    %7 = arith.addf %4, %6 : vector<8x128xf32>
    %8 = math.sin %7 : vector<8x128xf32>
    %c0_5 = arith.constant 0 : index
    %c0_6 = arith.constant 0 : index
    %9 = vector.load %arg4[%c0_5, %c0_6] : memref<8x128xf32, #tpu.memory_space<vmem>>, vector<8x128xf32>
    tpu.vector_store %arg4[%c0_5, %c0_6], %8 {strides = array<i32>} : memref<8x128xf32, #tpu.memory_space<vmem>>, vector<8x128xf32>,
    return
  }
  func.func @transform_0(%arg0: i32) -> (i32, i32) {
    %c0_i32 = arith.constant 0 : i32
    %c0_i32_0 = arith.constant 0 : i32
    return %arg0, %c0_i32 : i32, i32
  }
  func.func @transform_1(%arg0: i32) -> (i32, i32) {
    %c0_i32 = arith.constant 0 : i32
    %c0_i32_0 = arith.constant 0 : i32
    %c0_i32_1 = arith.constant 0 : i32
    return %c0_i32, %c0_i32_0 : i32, i32
  }
  func.func @transform_2(%arg0: i32) -> (i32, i32) {
    %c0_i32 = arith.constant 0 : i32
    %c0_i32_0 = arith.constant 0 : i32
    %c0_i32_1 = arith.constant 0 : i32
    return %c0_i32, %c0_i32_0 : i32, i32
  }
  func.func @transform_3(%arg0: i32) -> (i32, i32) {
    %c0_i32 = arith.constant 0 : i32
    %c0_i32_0 = arith.constant 0 : i32
    return %arg0, %c0_i32 : i32, i32
  }
}

</mosaic_0001>

<bundles_post_ra>
// kernel: tpu_custom_call.1
= control target key start
LH: loop header
LB: loop body
LE: loop exit
PB: predicated region body
PF: predicated region fallthrough
CT: control target
= control target key end

     0   :  { %v203_v1 = vmov 0   ;;  %s273_s0 = inlined_call_operand.vmem [shape: f32[8,1], index: 0, kind: input, shape index: {}]   ;;  %s274_s1 = inlined_call_operand.vmem [shape: f32[1,128], index: 1, kind: input, shape index: {}]   ;;  %s275_s2 = inlined_call_operand.vmem [shape: f32[1,128], index: 2, kind: input, shape index: {}]   ;;  %s276_s3 = inlined_call_operand.hbm [shape: f32[8,128], index: 3, kind: output, shape index: {}]  }
   0x1   :  { %v15_v0 = vld [vmem:[%s273_s0] sm:$0xff]  ;;  %174 = vset.pattern.permute.xlu0 %v203_v1 }
   0x2   :  { %19 = vperm.xlu0 %174, %v15_v0  }
   0x3   :  { %8 = vsyncpa [#allocation3], 0  ;;  %v156_v2 = vld [vmem:[%s274_s1] ss:$0 sm:$0xff]  ;;  %v204_v18 = vmov 2102212464  }
   0x4   :  { %v157_v3 = vld [vmem:[%s275_s2] ss:$0 sm:$0xff]  ;;  %v205_v20 = vmov 920167782   ;;  %v206_v24 = vmov 1326507024  }
   0x5   :  { %v207_v26 = vmov 683565275   ;;  %v208_v28 = vmov 2475754826   ;;  %v209_v31 = vmov 2131351028  }
   0x6   :  { %s210_s0 = smov [#allocation2]  }
   0x7   :  { %s148_s1 = sshll.u32 %s210_s0, 4  ;;  %s149_s1 = int_to_ptr.vmem [resolvable:$true] %s148_s1 }
   0x8   :  { %s179_s2 = scalar_lea.vmem %s149_s1, 128  ;;  %p184_p1 = scmp.lt.s32.totalorder %s149_s1, %s149_s1 }
   0x9   :  { %p180_p0 = scmp.ne.s32.totalorder %s149_s1, %s179_s2  ;;  %p185_p2 = scmp.lt.s32.totalorder %s179_s2, %s179_s2 }
   0xb   :  { %p186_p3 = por %p185_p2, %p184_p1 }
   0xd   :  { %p187_p4 = pnand %p186_p3, %p180_p0 }
  0x81   :  { %v20_v4 = vpop.permute.xlu0 %19 }
  0x82   :  { %v28_v5 = vmul.f32 %v156_v2, %v20_v4 }
  0x84   :  { %v240_v6 = vadd.f32 %v157_v3, %v28_v5 }
  0x86   :  { %v40_v7 = vand.u32 2139095040, %v240_v6  ;;  %v37_v8 = vand.u32 2147483647, %v240_v6  ;;  %vm39_vm7 = vcmp.lt.s32.totalorder %v240_v6, 0  ;;  %vm129_vm12 = vweird.f32 %v240_v6 }
  0x88   :  { %v41_v9 = vshrl.u32 %v40_v7, 23  ;;  %v44_v11 = vand.u32 8388607, %v37_v8  ;;  %vm38_vm8 = vcmp.le.f32.partialorder %v37_v8, 0.7853982 }
  0x8a   :  { %v158_v10 = vadd.s32 4294967169, %v41_v9  ;;  %v45_v14 = vor.u32 8388608, %v44_v11 }
  0x8c   :  { %v47_v12 = vadd.s32 1, %v158_v10  ;;  %v85_v22 = vshll.u32 %v45_v14, 8 }
  0x8e   :  { %vm48_vm0 = vcmp.gt.s32.totalorder %v47_v12, 0 }
  0x8f   :  { %v49_v13 = vsel %vm48_vm0, %v47_v12, 0 }
  0x90   :  { %v51_v15 = vand.u32 31, %v49_v13  ;;  %v50_v16 = vshrl.u32 %v49_v13, 5 }
  0x92   :  { %v52_v17 = vsub.s32 32, %v51_v15  ;;  %v63_v19 = vshll.u32 %v204_v18, %v51_v15  ;;  %v66_v21 = vshll.u32 %v205_v20, %v51_v15  ;;  %v54_v27 = vshll.u32 %v207_v26, %v51_v15 }
  0x93   :  { %v57_v30 = vshll.u32 %v208_v28, %v51_v15  ;;  %v60_v33 = vshll.u32 %v209_v31, %v51_v15  ;;  %vm72_vm1 = vcmp.lt.s32.totalorder %v50_v16, 4  ;;  %vm69_vm2 = vcmp.lt.s32.totalorder %v50_v16, 1 }
  0x94   :  { %v64_v23 = vshrl.u32 %v205_v20, %v52_v17  ;;  %v67_v25 = vshrl.u32 %v206_v24, %v52_v17  ;;  %v55_v29 = vshrl.u32 %v208_v28, %v52_v17  ;;  %v58_v32 = vshrl.u32 %v209_v31, %v52_v17 }
  0x95   :  { %v61_v34 = vshrl.u32 %v204_v18, %v52_v17  ;;  %v53_v38 = vshrl.u32 %v207_v26, %v52_v17  ;;  %vm70_vm3 = vcmp.lt.s32.totalorder %v50_v16, 2  ;;  %vm71_vm4 = vcmp.lt.s32.totalorder %v50_v16, 3 }
  0x96   :  { %v65_v35 = vor.u32 %v64_v23, %v63_v19  ;;  %v68_v36 = vor.u32 %v67_v25, %v66_v21  ;;  %v56_v37 = vor.u32 %v55_v29, %v54_v27  ;;  %v59_v39 = vor.u32 %v58_v32, %v57_v30 }
  0x97   :  { %v62_v40 = vor.u32 %v61_v34, %v60_v33 }
  0x98   :  { %v78_v41 = vsel %vm72_vm1, %v65_v35, 920167782  ;;  %v82_v42 = vsel %vm72_vm1, %v68_v36, 1326507024  ;;  %v77_v44 = vsel %vm69_vm2, %v56_v37, %v59_v39  ;;  %v73_v47 = vsel %vm69_vm2, %v53_v38, %v56_v37 }
  0x99   :  { %v74_v43 = vsel %vm72_vm1, %v62_v40, 2102212464  ;;  %v79_v45 = vsel %vm71_vm4, %v62_v40, %v78_v41  ;;  %v81_v46 = vsel %vm69_vm2, %v59_v39, %v62_v40  ;;  %v83_v50 = vsel %vm71_vm4, %v65_v35, %v82_v42 }
  0x9a   :  { %v75_v48 = vsel %vm71_vm4, %v59_v39, %v74_v43  ;;  %v80_v49 = vsel %vm70_vm3, %v77_v44, %v79_v45  ;;  %v84_v51 = vsel %vm70_vm3, %v81_v46, %v83_v50 }
  0x9b   :  { %v246_v52 = vmul.u32.u64.low %v85_v22, %v80_v49  ;;  %v247_v53 = vmul.u32.u64.high %v85_v22, %v80_v49, %v246_v52  ;;  %v249_v54 = vmul.u32.u64.low %v85_v22, %v84_v51  ;;  %v250_v55 = vmul.u32.u64.high %v85_v22, %v84_v51, %v249_v54 }
  0x9c   :  { %v76_v56 = vsel %vm70_vm3, %v73_v47, %v75_v48 }
  0x9d   :  { %v95_v57 = vadd.s32 1, %v247_v53  ;;  %v92_v58 = vmul.u32 %v85_v22, %v76_v56  ;;  %vm94_vm5 = vc.u32 %v250_v55, %v246_v52  ;;  %v93_v7 = vadd.s32 %v246_v52, %v250_v55 }
  0x9f   :  { %v96_v59 = vsel %vm94_vm5, %v95_v57, %v247_v53 }
  0xa0   :  { %v97_v60 = vadd.s32 %v96_v59, %v92_v58 }
  0xa2   :  { %v98_v61 = vadd.s32 536870912, %v97_v60 }
  0xa4   :  { %v99_v62 = vshrl.u32 %v98_v61, 30 }
  0xa6   :  { %v100_v63 = vshll.u32 %v99_v62, 30  ;;  %v123_v20 = vsub.s32 4, %v99_v62 }
  0xa8   :  { %v101_v0 = vsub.s32 %v97_v60, %v100_v63  ;;  %v124_v23 = vsel %vm39_vm7, %v123_v20, %v99_v62 }
  0xa9   :  { %v126_v25 = vsel %vm38_vm8, 0, %v124_v23 }
  0xaa   :  { %v103_v1 = vsub.s32 0, %v101_v0  ;;  %v130_v26 = vadd.s32 3, %v126_v25 }
  0xac   :  { %v159_v2 = vmin.u32 %v103_v1, %v101_v0  ;;  %v131_v27 = vand.u32 3, %v130_v26 }
  0xae   :  { %v105_v3 = vclz %v159_v2  ;;  %vm136_vm9 = vcmp.eq.s32.totalorder %v131_v27, 2  ;;  %vm133_vm10 = vcmp.eq.s32.totalorder %v131_v27, 0  ;;  %vm132_vm11 = vcmp.lt.s32.totalorder %v131_v27, 2 }
  0xb0   :  { %v160_v4 = vadd.s32 4294967294, %v105_v3 }
  0xb2   :  { %vm161_vm6 = vcmp.lt.s32.totalorder %v160_v4, 0 }
  0xb3   :  { %v108_v5 = vsel %vm161_vm6, 0, %v160_v4 }
  0xb4   :  { %v109_v9 = vsub.s32 32, %v108_v5  ;;  %v113_v10 = vsub.s32 4294967266, %v108_v5  ;;  %v110_v11 = vshll.u32 %v101_v0, %v108_v5 }
  0xb6   :  { %v111_v12 = vshrl.u32 %v93_v7, %v109_v9  ;;  %v114_v13 = vadd.s32 127, %v113_v10 }
  0xb8   :  { %v112_v14 = vor.u32 %v111_v12, %v110_v11  ;;  %v115_v15 = vshll.u32 %v114_v13, 23 }
  0xba   :  { %v116_v16 = vor.u32 4788187, %v115_v15  ;;  %v119_v18 = vcvt.s32.f32 %v112_v14 }
  0xbc   :  { %v117_v17 = vand.u32 2147483647, %v116_v16 }
  0xbe   :  { %v120_v19 = vmul.f32 %v119_v18, %v117_v17 }
  0xc0   :  { %v121_v21 = vxor.u32 2147483648, %v120_v19 }
  0xc2   :  { %v122_v22 = vsel %vm39_vm7, %v121_v21, %v120_v19 }
  0xc3   :  { %v125_v24 = vsel %vm38_vm8, %v240_v6, %v122_v22 }
  0xc4   :  { %175 = vcosq.f32 %v125_v24 }
  0xc5   :  { %177 = vsinq.f32 %v125_v24 }
  0xce   :  { %v176_v28 = vpop.eup %175 }
  0xcf   :  { %v178_v29 = vpop.eup %177  ;;  %v137_v30 = vxor.u32 2147483648, %v176_v28 }
  0xd0   :  { %v134_v31 = vxor.u32 2147483648, %v178_v29 }
  0xd1   :  { %v138_v32 = vsel %vm136_vm9, %v137_v30, %v178_v29 }
  0xd2   :  { %v135_v8 = vsel %vm133_vm10, %v176_v28, %v134_v31 }
  0xd3   :  { %v139_v33 = vsel %vm132_vm11, %v135_v8, %v138_v32 }
  0xd4   :  { %v140_v34 = vsel %vm129_vm12, nan, %v139_v33 }
  0xd5   :  { %141 = vst [vmem:[#allocation2] sm:$0xff] %v140_v34 }
  0xd6   :  { %190 = shalt.err (!%p187_p4)
}
  0xd7   :  { %s191_s20 = scalar_lea.hbm %s276_s3, 128 }
  0xd8   :  { %p192_p5 = scmp.ne.s32.totalorder %s276_s3, %s191_s20  ;;  %p195_p6 = scmp.lt.u32.totalorder %s191_s20, %s276_s3 }
  0xda   :  { %p197_p7 = pnand %p195_p6, %p192_p5 }
  0xdc   :  { %200 = shalt.err (!%p197_p7)
}
  0xdd   :  { %151 = dma.vmem_to_hbm [thread:$0]  %s149_s1, 128, %s276_s3, [#allocation3]  }
  0xde   :  { %201 = dma.done.wait [#allocation3], 128  }
  0xdf   :  { %202 = vsyncadd [#allocation3], 4294967168 }
  0xe0   :  { %155 = vsyncpa [#allocation3], 1 }

</bundles_post_ra>
